<compile_context>
chip_gen: v5e
topology: v5e:2x2
jax: 0.10.0
libtpu: 0.0.40
codegen_flags: <defaults>
</compile_context>

<pallas_src>
import jax
import jax.numpy as jnp
from jax.experimental import pallas as pl
from jax.experimental.pallas import tpu as pltpu

_LANE = 128
_SUBLANE = 8


def _normalize_kernel(sb_ref, x_ref, o_ref):
    # sb_ref: (TR, 2) f32 — column 0 = 1/std, column 1 = -mean/std per row.
    # x_ref / o_ref: (TR, TC) tiles of the lane-dense (B*C, H*W) slab.
    sb = sb_ref[...]
    scale = sb[:, 0:1]          # (TR, 1) f32
    bias = sb[:, 1:2]           # (TR, 1) f32
    x = x_ref[...].astype(jnp.float32)
    o_ref[...] = (x * scale + bias).astype(o_ref.dtype)


def normalize(x, mean, std):
    """(x - mean) / std with per-channel mean/std, x in NCHW."""
    B, C, H, W = x.shape
    R = B * C                   # one row per (batch, channel)
    L = H * W                   # lane-dense spatial extent

    in_dtype = x.dtype
    # Never echo an integer dtype back out: normalized values are fractional.
    out_dtype = in_dtype if jnp.issubdtype(in_dtype, jnp.floating) else jnp.float32

    # Per-channel constants in f32 (matches PyTorch's f32 broadcast semantics).
    m = jnp.broadcast_to(jnp.asarray(mean, jnp.float32).reshape(-1), (C,))
    s = jnp.broadcast_to(jnp.asarray(std, jnp.float32).reshape(-1), (C,))
    scale = 1.0 / s
    bias = -m * scale
    # Packed (R, 2) constants: one row per (b, c) pair, [scale, bias].
    sb = jnp.tile(jnp.stack([scale, bias], axis=-1), (B, 1))

    x2 = x.reshape(R, L)

    # Lane-pad L up to a multiple of 128 -> unmasked stores, bounded blocks.
    L_pad = ((L + _LANE - 1) // _LANE) * _LANE
    if L_pad != L:
        x2 = jnp.pad(x2, ((0, 0), (0, L_pad - L)))

    in_itemsize = jnp.dtype(in_dtype).itemsize
    out_itemsize = jnp.dtype(out_dtype).itemsize

    # --- column (lane) tile: a big multiple of 128.
    tc = min(L_pad, 8192)

    # --- row (sublane) tile: ~8 MiB of combined in+out traffic per grid step
    #     (~16 MiB double-buffered, well inside a 32 MiB scoped-VMEM budget).
    elems_per_step = (8 << 20) // (in_itemsize + out_itemsize)
    rows = max(_SUBLANE, elems_per_step // max(1, tc))
    if rows >= R:
        tr = R                                           # full extent (rule waived)
    else:
        tr = max(_SUBLANE, (rows // _SUBLANE) * _SUBLANE)

    # v7x megacore: keep >= 2 steps on the parallel grid so both TensorCores
    # are used; split rows first (keeps tiles lane-wide), else columns.
    if pl.cdiv(R, tr) * pl.cdiv(L_pad, tc) < 2:
        if R >= 2 * _SUBLANE:
            tr = max(_SUBLANE, (((R + 1) // 2) // _SUBLANE) * _SUBLANE)
        elif L_pad >= 2 * _LANE:
            tc = max(_LANE, ((L_pad // 2) // _LANE) * _LANE)

    grid = (pl.cdiv(R, tr), pl.cdiv(L_pad, tc))

    # Scoped VMEM: 32 MiB is enough for our tiles and safe on every
    # generation (v5e default is only 16 MiB; v7x has 64 MiB physical).
    try:
        phys_vmem = pltpu.get_tpu_info().vmem_capacity_bytes
    except Exception:  # pragma: no cover - hardware query best-effort
        phys_vmem = 64 << 20
    vmem_limit = min(32 << 20, phys_vmem // 2)

    cost = pl.CostEstimate(
        flops=2 * R * L_pad,
        transcendentals=0,
        bytes_accessed=R * L_pad * (in_itemsize + out_itemsize) + sb.size * 4,
    )

    out2 = pl.pallas_call(
        _normalize_kernel,
        out_shape=jax.ShapeDtypeStruct((R, L_pad), out_dtype),
        grid=grid,
        in_specs=[
            pl.BlockSpec((tr, 2), lambda r, c: (r, 0)),    # packed scale/bias (f32)
            pl.BlockSpec((tr, tc), lambda r, c: (r, c)),   # x tile
        ],
        out_specs=pl.BlockSpec((tr, tc), lambda r, c: (r, c)),
        compiler_params=pltpu.CompilerParams(
            dimension_semantics=("parallel", "parallel"),
            vmem_limit_bytes=vmem_limit,
        ),
        cost_estimate=cost,
    )(sb, x2)

    if L_pad != L:
        out2 = out2[:, :L]
    return out2.reshape(B, C, H, W)


if __name__ == "__main__":
    B, C, H, W = 2, 4, 16, 16

    # Deterministic "module parameters" (per-channel mean/std), as in __init__.
    mean = [0.485, 0.456, 0.406, 0.5]
    std = [0.229, 0.224, 0.225, 0.25]

    key = jax.random.PRNGKey(0)
    x = jax.random.uniform(key, (B, C, H, W), dtype=jnp.float32)

    out = normalize(x, mean, std)
    out = jax.block_until_ready(out)

    # Pure-JAX reference (same broadcasting as PyTorch (1, C, 1, 1)).
    mean_r = jnp.asarray(mean, jnp.float32).reshape(1, C, 1, 1)
    std_r = jnp.asarray(std, jnp.float32).reshape(1, C, 1, 1)
    ref = (x - mean_r) / std_r
    assert out.shape == ref.shape and out.dtype == ref.dtype
    # x*(1/s) - m*(1/s) vs (x - m)/s differs by ~1-2 ulp.
    assert jnp.allclose(out, ref, rtol=1e-5, atol=1e-6)

    print("KERNEL_OK")
</pallas_src>

<mosaic_0001>
module attributes {stable_mosaic.version = 11 : i64} {
  func.func @_normalize_kernel(%arg0: i32, %arg1: i32, %arg2: memref<8x2xf32, #tpu.memory_space<vmem>>, %arg3: memref<8x128xf32, #tpu.memory_space<vmem>>, %arg4: memref<8x128xf32, #tpu.memory_space<vmem>>) attributes {dimension_semantics = [#tpu.dimension_semantics<parallel>, #tpu.dimension_semantics<parallel>], iteration_bounds = array<i64: 1, 2>, scalar_prefetch = 0 : i64, scratch_operands = 0 : i64, tpu.core_type = #tpu.core_type<tc>, window_params = [{transform_indices = @transform_0, window_bounds = array<i64: 8, 2>}, {transform_indices = @transform_1, window_bounds = array<i64: 8, 128>}, {transform_indices = @transform_2, window_bounds = array<i64: 8, 128>}]} {
    %c0 = arith.constant 0 : index
    %c0_0 = arith.constant 0 : index
    %0 = vector.load %arg2[%c0, %c0_0] : memref<8x2xf32, #tpu.memory_space<vmem>>, vector<8x2xf32>
    %1 = vector.extract_strided_slice %0 {offsets = [0, 0], sizes = [8, 1], strides = [1, 1]} : vector<8x2xf32> to vector<8x1xf32>
    %2 = vector.extract_strided_slice %0 {offsets = [0, 1], sizes = [8, 1], strides = [1, 1]} : vector<8x2xf32> to vector<8x1xf32>
    %c0_1 = arith.constant 0 : index
    %c0_2 = arith.constant 0 : index
    %3 = vector.load %arg3[%c0_1, %c0_2] : memref<8x128xf32, #tpu.memory_space<vmem>>, vector<8x128xf32>
    %4 = vector.broadcast %1 : vector<8x1xf32> to vector<8x128xf32>
    %5 = arith.mulf %3, %4 : vector<8x128xf32>
    %6 = vector.broadcast %2 : vector<8x1xf32> to vector<8x128xf32>
    %7 = arith.addf %5, %6 : vector<8x128xf32>
    %c0_3 = arith.constant 0 : index
    %c0_4 = arith.constant 0 : index
    %8 = vector.load %arg4[%c0_3, %c0_4] : memref<8x128xf32, #tpu.memory_space<vmem>>, vector<8x128xf32>
    tpu.vector_store %arg4[%c0_3, %c0_4], %7 {strides = array<i32>} : memref<8x128xf32, #tpu.memory_space<vmem>>, vector<8x128xf32>,
    return
  }
  func.func @transform_0(%arg0: i32, %arg1: i32) -> (i32, i32) {
    %c0_i32 = arith.constant 0 : i32
    %c0_i32_0 = arith.constant 0 : i32
    return %arg0, %c0_i32 : i32, i32
  }
  func.func @transform_1(%arg0: i32, %arg1: i32) -> (i32, i32) {
    %c0_i32 = arith.constant 0 : i32
    return %arg0, %arg1 : i32, i32
  }
  func.func @transform_2(%arg0: i32, %arg1: i32) -> (i32, i32) {
    %c0_i32 = arith.constant 0 : i32
    return %arg0, %arg1 : i32, i32
  }
}

</mosaic_0001>

<bundles_post_ra>
// kernel: tpu_custom_call.1
= control target key start
LH: loop header
LB: loop body
LE: loop exit
PB: predicated region body
PF: predicated region fallthrough
CT: control target
= control target key end

     0   :  { %7 = vsyncpa [#allocation3], 0  ;;  %s659_s0 = inlined_call_operand.vmem [shape: f32[8,2], index: 0, kind: input, shape index: {}]   ;;  %s660_s1 = inlined_call_operand.hbm [shape: f32[8,256], index: 1, kind: input, shape index: {}]   ;;  %s661_s2 = inlined_call_operand.hbm [shape: f32[8,256], index: 2, kind: output, shape index: {}]  }
   0x1   :  { %9 = vsyncpa [#allocation3 + $0x1], 0 }
   0x2   :  { %10 = vsyncpa [#allocation4], 0 }
   0x3   :  { %12 = vsyncpa [#allocation4 + $0x1], 0  ;;  %s536_s9 = smov 0   ;;  %s538_s10 = smov 0  }
   0x4   :  { %s540_s11 = smov 0   ;;  %s542_s12 = smov 0  }
   0x5   :  { %s544_s13 = smov 0   ;;  %s546_s14 = smov 0  }
   0x6 LB: > { %s325_s15 = sadd.s32 4294967295, %s517_s14   ;;  %s326_s16 = sadd.s32 4294967294, %s517_s14   ;;  %s517_s14 = sphi %s546_s14, %s18_s14   ;;  %s513_s13 = sphi %s544_s13, %s670_s13   ;;  %s509_s12 = sphi %s542_s12, %s669_s12   ;;  %s505_s11 = sphi %s540_s11, %s668_s11   ;;  %s501_s10 = sphi %s538_s10, %s667_s10   ;;  %s497_s9 = sphi %s536_s9, %s666_s9  }
   0x7   : > { %s27_s17 = sadd.s32 1, %s513_s13  ;;  %s65_s18 = sadd.s32 1, %s505_s11 }
   0x8   : > { %p28_p0 = scmp.ge.s32.totalorder %s27_s17, 2  ;;  %p72_p1 = scmp.ne.s32.totalorder %s505_s11, %s501_s10 }
   0x9   : > { %p73_p2 = scmp.eq.s32.totalorder %s517_s14, 0  ;;  %p78_p3 = scmp.ne.s32.totalorder %s501_s10, %s497_s9 }
   0xa   : > { %s672_s17 = smov (%p28_p0, %s27_s17), 0  ;;  %p79_p5 = scmp.eq.s32.totalorder %s325_s15, 0 }
   0xb   : > { %p577_p4 = por %p73_p2, %p72_p1  ;;  %s61_s20 = ssub.s32 %s513_s13, %s672_s17 }
   0xc   : > { %p104_p6 = scmp.eq.s32.totalorder %s325_s15, 1  ;;  %p63_p7 = scmp.eq.s32.totalorder %s61_s20, 0 }
   0xd   : > { %p583_p8 = por %p79_p5, %p78_p3  ;;  %p110_p10 = scmp.eq.s32.totalorder %s326_s16, 1 }
   0xe   : > { %p587_p9 = por %p104_p6, %p72_p1  ;;  %p329_p12 = scmp.ge.s32.totalorder %s517_s14, 2 }
   0xf   : > { %s592_s23 = scalar_select %p63_p7, %s505_s11, %s65_s18  }
  0x10   : > { %p594_p11 = por %p110_p10, %p78_p3  ;;  %p351_p13 = scmp.lt.s32.totalorder %s517_s14, 2 }
  0x11   : > { %s137_s25 = sand.u32 1, %s505_s11   ;;  %s331_s27 = sshll.u32 %s513_s13, 3 }
  0x12   : > { %s330_s26 = sshll.u32 %s137_s25, 3  ;;  %s147_s30 = scalar_lea.hbm %s660_s1, %s331_s27 }
  0x13   : > { %s141_s3 = scalar_lea.vmem [#allocation2], %s330_s26  ;;  %s149_s5 = sshll.u32 %s147_s30, 4  ;;  %s150_s5 = int_to_ptr.hbm [resolvable:$true] %s149_s5 }
  0x14   : > { %s151_s4 = sshll.u32 %s141_s3, 4  ;;  %p344_p0 = pnand %p351_p13, %p577_p4  ;;  %s152_s4 = int_to_ptr.vmem [resolvable:$true] %s151_s4 }
  0x15   : > { %p332_p1 = scmp.ge.s32.totalorder %s517_s14, 1  ;;  %p156_p2 = scmp.lt.s32.totalorder %s517_s14, 3 }
  0x16   : > { %s138_s6 = scalar_lea.sflag [#allocation3], %s137_s25 }
  0x17   : > { %346 = dma.hbm_to_vmem [thread:$0]  (!%p344_p0), %s150_s5, 128, %s152_s4, %s138_s6  }
  0x18   : > { %p157_p3 = pnand %p332_p1, %p156_p2 }
  0x19   : > { %s610_s7 = sand.u32 (!%p157_p3), 1, %s501_s10  }
  0x1a   : > { %160 = sbr.rel (%p157_p3) target bundleno = 163 (0xa3), region = 28  ;;  %s333_s8 = sshll.u32 (!%p157_p3), %s610_s7, 3 }
  0x1b   : > { %s163_s15 = scalar_lea.sflag (!%p157_p3), [#allocation3], %s610_s7  ;;  %s166_s16 = scalar_lea.vmem (!%p157_p3), [#allocation2], %s333_s8 }
  0x1f   : > { %488 = dma.done.wait (%p583_p8), %s163_s15, 128  }
  0x20   : > { %490 = vsyncadd (%p583_p8), %s163_s15, 4294967168  ;;  %v519_v0 = vmov 0   ;;  %v196_v1 = vld [vmem:[%s659_s0] sm:$0xff]  ;;  %v520_v2 = vmov 1   ;;  %s336_s20 = sshll.u32 %s509_s12, 3  ;;  %s191_s21 = scalar_lea.vmem [#allocation5], %s333_s8 }
  0x21   : > { %403 = vset.pattern.permute.xlu0 %v519_v0  ;;  %s223_s27 = scalar_lea.hbm %s661_s2, %s336_s20  ;;  %v197_v4 = vld [vmem:[%s166_s16] sm:$0xff]  ;;  %s225_s28 = sshll.u32 %s191_s21, 4  ;;  %s226_s28 = int_to_ptr.vmem [resolvable:$true] %s225_s28 }
  0x22   : > { %200 = vperm.xlu0 %403, %v196_v1   ;;  %s227_s29 = sshll.u32 %s223_s27, 4  ;;  %s211_s30 = scalar_lea.sflag [#allocation4], %s610_s7  ;;  %s228_s29 = int_to_ptr.hbm [resolvable:$true] %s227_s29 }
  0x23   : > { %s449_s3 = sshra.s32 %s228_s29, 4  ;;  %s455_s6 = scalar_lea.hbm %s661_s2, 16  ;;  %s450_s3 = int_to_ptr.hbm [resolvable:$true] %s449_s3 }
  0x24   : > { %s451_s4 = scalar_lea.hbm %s450_s3, 8  ;;  %p456_p7 = scmp.lt.s32.totalorder %s450_s3, %s661_s2 }
  0x25   : > { %p452_p4 = scmp.ne.s32.totalorder %s450_s3, %s451_s4  ;;  %p457_p8 = scmp.lt.s32.totalorder %s455_s6, %s451_s4 }
  0x27   : > { %p453_p5 = pnand %p452_p4, %p587_p9  ;;  %p458_p10 = por %p457_p8, %p456_p7 }
  0x29   : > { %p454_p6 = pneg %p453_p5 }
  0x2a   : > { %404 = vset.pattern.permute.xlu0 %v520_v2 }
  0x2b   : > { %205 = vperm.xlu0 %404, %v196_v1   ;;  %p459_p13 = pnand %p458_p10, %p454_p6 }
  0x94   : > { %v201_v3 = vpop.permute.xlu0 %200 }
  0x95   : > { %v203_v5 = vmul.f32 %v201_v3, %v197_v4 }
  0x9d   : > { %v206_v6 = vpop.permute.xlu0 %205 }
  0x9e   : > { %v208_v7 = vadd.f32 %v206_v6, %v203_v5 }
  0xa0   : > { %209 = vst [vmem:[%s191_s21] sm:$0xff] %v208_v7 }
  0xa1   : > { %462 = shalt.err (!%p459_p13)
}
  0xa2   : > { %341 = dma.vmem_to_hbm [thread:$0]  (%p587_p9), %s226_s28, 128, %s228_s29, %s211_s30  }
  0xa3 PF: > { %s239_s7 = sand.u32 1, %s497_s9   ;;  %p348_p0 = pnand %p329_p12, %p594_p11 }
  0xa4   : > { %s240_s16 = scalar_lea.sflag [#allocation4], %s239_s7 }
  0xa5   : > { %p349_p1 = pneg %p348_p0 }
  0xa7   : > { %492 = dma.done.wait (%p349_p1), %s240_s16, 128  }
  0xa8   : > { %494 = vsyncadd (%p349_p1), %s240_s16, 4294967168  ;;  %s18_s14 = sadd.s32 1, %s517_s14   ;;  %s666_s9 = smov %s501_s10 }
  0xa9   : > { %p15_p2 = scmp.ge.s32.totalorder %s18_s14, 4   ;;  %s667_s10 = smov %s505_s11 }
  0xaa   : > { %s668_s11 = smov %s592_s23  ;;  %s669_s12 = smov %s513_s13 }
  0xab   : > { %s670_s13 = smov %s672_s17  ;;  %17 = sbr.rel (!%p15_p2) target bundleno = 6 (0x6), region = 76 }
  0xb0   :  { %246 = vsyncpa [#allocation3], 1 }
  0xb1   :  { %248 = vsyncpa [#allocation3 + $0x1], 1 }
  0xb2   :  { %249 = vsyncpa [#allocation4], 1 }
  0xb3   :  { %251 = vsyncpa [#allocation4 + $0x1], 1 }

</bundles_post_ra>
